<compile_context>
chip_gen: v7x
topology: tpu7x:2x2x1
jax: 0.10.0
libtpu: 0.0.40
codegen_flags: <defaults>
</compile_context>

<pallas_src>
import functools

import jax
import jax.numpy as jnp
from jax.experimental import pallas as pl
from jax.experimental.pallas import tpu as pltpu

BN_EPS = 1e-5
L2_EPS = 1e-12


def _ngcn_kernel(max_hops, rh, x_ref, adj_ref, w1_ref, w2_ref, bias_ref,
                 wo_ref, bo_ref, out_ref, cells_ref):
    """Single-block NGCN forward.

    x_ref     : [N, D]
    adj_ref   : [N, N]            (unnormalized dense adjacency)
    w1_ref    : [P, D, R*H]       (BN-folded hidden weights, fused over replicas)
    w2_ref    : [P, R*H, R*O]     (block-diagonal output weights per power)
    bias_ref  : [P, 1, R*H + R*O] (packed b1' | b2)
    wo_ref    : [P*R*O, O]        (final linear, rows permuted to power-major order)
    bo_ref    : [1, O]
    out_ref   : [N, O]
    cells_ref : [N, P*R*O]        (lane-dense, power-major cell outputs, pre-ReLU)
    """
    P = max_hops + 1

    x = x_ref[...].astype(jnp.float32)          # [N, D]
    adj = adj_ref[...].astype(jnp.float32)      # [N, N]

    # F.normalize(x, p=2, dim=1)
    norm = jnp.sqrt(jnp.sum(x * x, axis=1, keepdims=True))
    x = x / jnp.maximum(norm, L2_EPS)

    # symmetric D^-1/2 A D^-1/2 normalization
    deg = jnp.sum(adj, axis=1, keepdims=True)   # [N, 1]
    dinv = jnp.where(deg > 0, jax.lax.rsqrt(deg), 0.0)
    a = dinv * adj * dinv.reshape(1, -1)        # [N, N]

    w1 = w1_ref[...]                            # [P, D, R*H]
    w2 = w2_ref[...]                            # [P, R*H, R*O]
    bias = bias_ref[...]                        # [P, 1, R*H + R*O]

    ys = []
    xp = x                                      # shared A^p x power chain
    for p in range(P):
        if p > 0:
            xp = jnp.dot(a, xp, preferred_element_type=jnp.float32)
        # fused (BN-folded) hidden linear + ReLU for all replicas of this power
        h = jnp.dot(xp, w1[p], preferred_element_type=jnp.float32) + bias[p, :, :rh]
        h = jnp.maximum(h, 0.0)                 # dropout = identity in eval
        # output linear applied BEFORE the post-propagation (reassociated),
        # bias added after the A^p chain to keep exact semantics.
        z = jnp.dot(h, w2[p], preferred_element_type=jnp.float32)
        for _ in range(p):
            z = jnp.dot(a, z, preferred_element_type=jnp.float32)
        ys.append(z + bias[p, :, rh:])          # [N, R*O]

    cat = jnp.concatenate(ys, axis=1)           # [N, P*R*O], power-major order
    cells_ref[...] = cat                        # lane-dense cells output (pre-ReLU)

    out_ref[...] = (jnp.dot(jnp.maximum(cat, 0.0), wo_ref[...],
                            preferred_element_type=jnp.float32) + bo_ref[...])


def _prepare_params(params, replicas, max_hops):
    """Fold BN, fuse per-replica weights per power, pack biases, permute wo."""
    P = max_hops + 1
    R = replicas
    w1, b1 = params["w1"], params["b1"]          # [C, D, H], [C, 1, H]
    w2, b2 = params["w2"], params["b2"]          # [C, H, O], [C, 1, O]
    wo, bo = params["wo"], params["bo"]          # [C*O, O], [1, O]
    C, D, H = w1.shape
    O = w2.shape[-1]
    assert C == R * P

    # Fold eval-mode BatchNorm into the hidden linear.
    scale = params["gamma"] * jax.lax.rsqrt(params["var"] + BN_EPS)   # [C, 1, H]
    w1f = w1 * scale                                                  # [C, D, H]
    b1f = (b1 - params["mean"]) * scale + params["beta"]              # [C, 1, H]

    # Regroup the cell axis (replica, hop) -> (hop, replica).
    w1g = w1f.reshape(R, P, D, H).transpose(1, 0, 2, 3)               # [P, R, D, H]
    b1g = b1f.reshape(R, P, 1, H).transpose(1, 0, 2, 3)               # [P, R, 1, H]
    w2g = w2.reshape(R, P, H, O).transpose(1, 0, 2, 3)                # [P, R, H, O]
    b2g = b2.reshape(R, P, 1, O).transpose(1, 0, 2, 3)                # [P, R, 1, O]

    # Fused hidden linear per power: [P, D, R*H].
    w1_fused = w1g.transpose(0, 2, 1, 3).reshape(P, D, R * H)
    b1_fused = b1g.reshape(P, 1, R * H)

    # Block-diagonal output linear per power: [P, R*H, R*O].
    w2_fused = jnp.zeros((P, R * H, R * O), w2.dtype)
    for r in range(R):
        w2_fused = w2_fused.at[:, r * H:(r + 1) * H, r * O:(r + 1) * O].set(w2g[:, r])
    b2_fused = b2g.reshape(P, 1, R * O)

    bias_pack = jnp.concatenate([b1_fused, b2_fused], axis=-1)        # [P, 1, R*H+R*O]

    # Permute wo rows from (replica, hop, o) order to (hop, replica, o) order
    # so the kernel can consume its power-major concat directly.
    wo_perm = wo.reshape(R, P, O, O).transpose(1, 0, 2, 3).reshape(P * R * O, O)

    return w1_fused, w2_fused, bias_pack, wo_perm, bo


def ngcn_forward(x, adj, params, replicas, max_hops):
    N = x.shape[0]
    P = max_hops + 1
    C = replicas * P
    H = params["w1"].shape[-1]
    O = params["w2"].shape[-1]
    RH = replicas * H

    w1_fused, w2_fused, bias_pack, wo_perm, bo = _prepare_params(
        params, replicas, max_hops)

    kernel = functools.partial(_ngcn_kernel, max_hops, RH)
    vmem = pl.BlockSpec(memory_space=pltpu.MemorySpace.VMEM)
    out, cells_flat = pl.pallas_call(
        kernel,
        out_shape=(jax.ShapeDtypeStruct((N, O), jnp.float32),
                   jax.ShapeDtypeStruct((N, C * O), jnp.float32)),
        in_specs=[vmem] * 7,
        out_specs=(vmem, vmem),
    )(x, adj, w1_fused, w2_fused, bias_pack, wo_perm, bo)

    # Lane-dense [N, P*R*O] (power-major) -> [N, C, O] with C in (replica, hop)
    # order to match torch.stack(cell_outputs, dim=1).
    cells = (cells_flat.reshape(N, P, replicas, O)
             .transpose(0, 2, 1, 3).reshape(N, C, O))
    return out, cells


def reference(x, adj, params, powers):
    """Pure-JAX reference mirroring the PyTorch forward (eval mode)."""
    x = x / jnp.maximum(jnp.linalg.norm(x, axis=1, keepdims=True), L2_EPS)
    deg = adj.sum(1, keepdims=True)
    dinv = jnp.where(deg > 0, 1.0 / jnp.sqrt(deg), 0.0)
    a = dinv * adj * dinv.reshape(1, -1)
    ys = []
    for c, p in enumerate(powers):
        h = x
        for _ in range(p):
            h = a @ h
        h = h @ params["w1"][c] + params["b1"][c]
        h = (h - params["mean"][c]) / jnp.sqrt(params["var"][c] + BN_EPS)
        h = h * params["gamma"][c] + params["beta"][c]
        h = jax.nn.relu(h)
        for _ in range(p):
            h = a @ h
        ys.append(h @ params["w2"][c] + params["b2"][c])
    cells = jnp.stack(ys, axis=1)
    cat = jax.nn.relu(jnp.concatenate(ys, axis=1))
    return cat @ params["wo"] + params["bo"], cells


if __name__ == "__main__":
    N, D, O, H = 16, 8, 4, 10          # nodes, input_dim, output_dim, gcn_hidden_dim
    max_hops, replicas = 3, 3
    C = replicas * (max_hops + 1)
    powers = [h for _ in range(replicas) for h in range(max_hops + 1)]

    key = jax.random.PRNGKey(0)
    keys = jax.random.split(key, 10)

    x = jax.random.normal(keys[0], (N, D), jnp.float32)
    a = (jax.random.uniform(keys[1], (N, N)) < 0.3).astype(jnp.float32)
    adj = jnp.clip(a + a.T + jnp.eye(N, dtype=jnp.float32), 0.0, 1.0)

    params = dict(
        # Linear weights stored pre-transposed ([in, out]) for direct matmul.
        w1=jax.random.uniform(keys[2], (C, D, H), jnp.float32, -0.3, 0.3),
        b1=jax.random.uniform(keys[3], (C, 1, H), jnp.float32, -0.3, 0.3),
        gamma=jnp.ones((C, 1, H), jnp.float32),     # BN weight init
        beta=jnp.zeros((C, 1, H), jnp.float32),     # BN bias init
        mean=jnp.zeros((C, 1, H), jnp.float32),     # BN running mean
        var=jnp.ones((C, 1, H), jnp.float32),       # BN running var
        w2=jax.random.uniform(keys[4], (C, H, O), jnp.float32, -0.3, 0.3),
        b2=jax.random.uniform(keys[5], (C, 1, O), jnp.float32, -0.3, 0.3),
        wo=jax.random.uniform(keys[6], (C * O, O), jnp.float32, -0.15, 0.15),
        bo=jax.random.uniform(keys[7], (1, O), jnp.float32, -0.15, 0.15),
    )

    out, cells = jax.block_until_ready(
        ngcn_forward(x, adj, params, replicas, max_hops))
    ref_out, ref_cells = reference(x, adj, params, powers)

    assert out.shape == (N, O) and cells.shape == (N, C, O)
    assert jnp.allclose(out, ref_out, atol=1e-4, rtol=1e-4)
    assert jnp.allclose(cells, ref_cells, atol=1e-4, rtol=1e-4)
    print("KERNEL_OK")
</pallas_src>

<mosaic_0001>
module attributes {stable_mosaic.version = 11 : i64} {
  func.func @_ngcn_kernel(%arg0: memref<16x8xf32, #tpu.memory_space<vmem>>, %arg1: memref<16x16xf32, #tpu.memory_space<vmem>>, %arg2: memref<4x8x30xf32, #tpu.memory_space<vmem>>, %arg3: memref<4x30x12xf32, #tpu.memory_space<vmem>>, %arg4: memref<4x1x42xf32, #tpu.memory_space<vmem>>, %arg5: memref<48x4xf32, #tpu.memory_space<vmem>>, %arg6: memref<1x4xf32, #tpu.memory_space<vmem>>, %arg7: memref<16x4xf32, #tpu.memory_space<vmem>>, %arg8: memref<16x48xf32, #tpu.memory_space<vmem>>) attributes {dimension_semantics = [], scalar_prefetch = 0 : i64, scratch_operands = 0 : i64, tpu.core_type = #tpu.core_type<tc>} {
    %c0 = arith.constant 0 : index
    %c0_0 = arith.constant 0 : index
    %0 = vector.load %arg0[%c0, %c0_0] : memref<16x8xf32, #tpu.memory_space<vmem>>, vector<16x8xf32>
    %c0_1 = arith.constant 0 : index
    %c0_2 = arith.constant 0 : index
    %1 = vector.load %arg1[%c0_1, %c0_2] : memref<16x16xf32, #tpu.memory_space<vmem>>, vector<16x16xf32>
    %2 = arith.mulf %0, %0 : vector<16x8xf32>
    %cst = arith.constant dense<0.000000e+00> : vector<16xf32>
    %3 = vector.multi_reduction <add>, %2, %cst [1] : vector<16x8xf32> to vector<16xf32>
    %4 = vector.shape_cast %3 : vector<16xf32> to vector<16x1xf32>
    %5 = math.sqrt %4 : vector<16x1xf32>
    %cst_3 = arith.constant 9.99999996E-13 : f32
    %6 = vector.broadcast %cst_3 : f32 to vector<16x1xf32>
    %7 = arith.maximumf %5, %6 : vector<16x1xf32>
    %8 = vector.broadcast %7 : vector<16x1xf32> to vector<16x8xf32>
    %9 = arith.divf %0, %8 : vector<16x8xf32>
    %cst_4 = arith.constant dense<0.000000e+00> : vector<16xf32>
    %10 = vector.multi_reduction <add>, %1, %cst_4 [1] : vector<16x16xf32> to vector<16xf32>
    %11 = vector.shape_cast %10 : vector<16xf32> to vector<16x1xf32>
    %cst_5 = arith.constant 0.000000e+00 : f32
    %12 = vector.broadcast %cst_5 : f32 to vector<16x1xf32>
    %13 = arith.cmpf ogt, %11, %12 : vector<16x1xf32>
    %14 = math.rsqrt %11 : vector<16x1xf32>
    %cst_6 = arith.constant 0.000000e+00 : f32
    %15 = vector.broadcast %cst_6 : f32 to vector<16x1xf32>
    %16 = arith.select %13, %14, %15 : vector<16x1xi1>, vector<16x1xf32>
    %17 = vector.broadcast %16 : vector<16x1xf32> to vector<16x16xf32>
    %18 = arith.mulf %17, %1 : vector<16x16xf32>
    %19 = vector.shape_cast %16 : vector<16x1xf32> to vector<1x16xf32>
    %20 = vector.broadcast %19 : vector<1x16xf32> to vector<16x16xf32>
    %21 = arith.mulf %18, %20 : vector<16x16xf32>
    %c0_7 = arith.constant 0 : index
    %c0_8 = arith.constant 0 : index
    %c0_9 = arith.constant 0 : index
    %22 = vector.load %arg2[%c0_7, %c0_8, %c0_9] : memref<4x8x30xf32, #tpu.memory_space<vmem>>, vector<4x8x30xf32>
    %c0_10 = arith.constant 0 : index
    %c0_11 = arith.constant 0 : index
    %c0_12 = arith.constant 0 : index
    %23 = vector.load %arg3[%c0_10, %c0_11, %c0_12] : memref<4x30x12xf32, #tpu.memory_space<vmem>>, vector<4x30x12xf32>
    %c0_13 = arith.constant 0 : index
    %c0_14 = arith.constant 0 : index
    %c0_15 = arith.constant 0 : index
    %24 = vector.load %arg4[%c0_13, %c0_14, %c0_15] : memref<4x1x42xf32, #tpu.memory_space<vmem>>, vector<4x1x42xf32>
    %25 = vector.extract_strided_slice %22 {offsets = [0, 0, 0], sizes = [1, 8, 30], strides = [1, 1, 1]} : vector<4x8x30xf32> to vector<1x8x30xf32>
    %26 = vector.shape_cast %25 : vector<1x8x30xf32> to vector<8x30xf32>
    %cst_16 = arith.constant dense<0.000000e+00> : vector<16x30xf32>
    %27 = tpu.matmul %9, %26, %cst_16 {dimension_numbers = #tpu.dot_dimension_numbers<[1], [0], [0], [1], [0, 0, 1, 1], [], []>} : vector<16x8xf32>, vector<8x30xf32>, vector<16x30xf32> -> vector<16x30xf32>
    %28 = vector.extract_strided_slice %24 {offsets = [0, 0, 0], sizes = [1, 1, 30], strides = [1, 1, 1]} : vector<4x1x42xf32> to vector<1x1x30xf32>
    %29 = vector.shape_cast %28 : vector<1x1x30xf32> to vector<1x30xf32>
    %30 = vector.broadcast %29 : vector<1x30xf32> to vector<16x30xf32>
    %31 = arith.addf %27, %30 : vector<16x30xf32>
    %cst_17 = arith.constant 0.000000e+00 : f32
    %32 = vector.broadcast %cst_17 : f32 to vector<16x30xf32>
    %33 = arith.maximumf %31, %32 : vector<16x30xf32>
    %34 = vector.extract_strided_slice %23 {offsets = [0, 0, 0], sizes = [1, 30, 12], strides = [1, 1, 1]} : vector<4x30x12xf32> to vector<1x30x12xf32>
    %35 = vector.shape_cast %34 : vector<1x30x12xf32> to vector<30x12xf32>
    %cst_18 = arith.constant dense<0.000000e+00> : vector<16x12xf32>
    %36 = tpu.matmul %33, %35, %cst_18 {dimension_numbers = #tpu.dot_dimension_numbers<[1], [0], [0], [1], [0, 0, 1, 1], [], []>} : vector<16x30xf32>, vector<30x12xf32>, vector<16x12xf32> -> vector<16x12xf32>
    %37 = vector.extract_strided_slice %24 {offsets = [0, 0, 30], sizes = [1, 1, 12], strides = [1, 1, 1]} : vector<4x1x42xf32> to vector<1x1x12xf32>
    %38 = vector.shape_cast %37 : vector<1x1x12xf32> to vector<1x12xf32>
    %39 = vector.broadcast %38 : vector<1x12xf32> to vector<16x12xf32>
    %40 = arith.addf %36, %39 : vector<16x12xf32>
    %cst_19 = arith.constant dense<0.000000e+00> : vector<16x8xf32>
    %41 = tpu.matmul %21, %9, %cst_19 {dimension_numbers = #tpu.dot_dimension_numbers<[1], [0], [0], [1], [0, 0, 1, 1], [], []>} : vector<16x16xf32>, vector<16x8xf32>, vector<16x8xf32> -> vector<16x8xf32>
    %42 = vector.extract_strided_slice %22 {offsets = [1, 0, 0], sizes = [1, 8, 30], strides = [1, 1, 1]} : vector<4x8x30xf32> to vector<1x8x30xf32>
    %43 = vector.shape_cast %42 : vector<1x8x30xf32> to vector<8x30xf32>
    %cst_20 = arith.constant dense<0.000000e+00> : vector<16x30xf32>
    %44 = tpu.matmul %41, %43, %cst_20 {dimension_numbers = #tpu.dot_dimension_numbers<[1], [0], [0], [1], [0, 0, 1, 1], [], []>} : vector<16x8xf32>, vector<8x30xf32>, vector<16x30xf32> -> vector<16x30xf32>
    %45 = vector.extract_strided_slice %24 {offsets = [1, 0, 0], sizes = [1, 1, 30], strides = [1, 1, 1]} : vector<4x1x42xf32> to vector<1x1x30xf32>
    %46 = vector.shape_cast %45 : vector<1x1x30xf32> to vector<1x30xf32>
    %47 = vector.broadcast %46 : vector<1x30xf32> to vector<16x30xf32>
    %48 = arith.addf %44, %47 : vector<16x30xf32>
    %cst_21 = arith.constant 0.000000e+00 : f32
    %49 = vector.broadcast %cst_21 : f32 to vector<16x30xf32>
    %50 = arith.maximumf %48, %49 : vector<16x30xf32>
    %51 = vector.extract_strided_slice %23 {offsets = [1, 0, 0], sizes = [1, 30, 12], strides = [1, 1, 1]} : vector<4x30x12xf32> to vector<1x30x12xf32>
    %52 = vector.shape_cast %51 : vector<1x30x12xf32> to vector<30x12xf32>
    %cst_22 = arith.constant dense<0.000000e+00> : vector<16x12xf32>
    %53 = tpu.matmul %50, %52, %cst_22 {dimension_numbers = #tpu.dot_dimension_numbers<[1], [0], [0], [1], [0, 0, 1, 1], [], []>} : vector<16x30xf32>, vector<30x12xf32>, vector<16x12xf32> -> vector<16x12xf32>
    %cst_23 = arith.constant dense<0.000000e+00> : vector<16x12xf32>
    %54 = tpu.matmul %21, %53, %cst_23 {dimension_numbers = #tpu.dot_dimension_numbers<[1], [0], [0], [1], [0, 0, 1, 1], [], []>} : vector<16x16xf32>, vector<16x12xf32>, vector<16x12xf32> -> vector<16x12xf32>
    %55 = vector.extract_strided_slice %24 {offsets = [1, 0, 30], sizes = [1, 1, 12], strides = [1, 1, 1]} : vector<4x1x42xf32> to vector<1x1x12xf32>
    %56 = vector.shape_cast %55 : vector<1x1x12xf32> to vector<1x12xf32>
    %57 = vector.broadcast %56 : vector<1x12xf32> to vector<16x12xf32>
    %58 = arith.addf %54, %57 : vector<16x12xf32>
    %cst_24 = arith.constant dense<0.000000e+00> : vector<16x8xf32>
    %59 = tpu.matmul %21, %41, %cst_24 {dimension_numbers = #tpu.dot_dimension_numbers<[1], [0], [0], [1], [0, 0, 1, 1], [], []>} : vector<16x16xf32>, vector<16x8xf32>, vector<16x8xf32> -> vector<16x8xf32>
    %60 = vector.extract_strided_slice %22 {offsets = [2, 0, 0], sizes = [1, 8, 30], strides = [1, 1, 1]} : vector<4x8x30xf32> to vector<1x8x30xf32>
    %61 = vector.shape_cast %60 : vector<1x8x30xf32> to vector<8x30xf32>
    %cst_25 = arith.constant dense<0.000000e+00> : vector<16x30xf32>
    %62 = tpu.matmul %59, %61, %cst_25 {dimension_numbers = #tpu.dot_dimension_numbers<[1], [0], [0], [1], [0, 0, 1, 1], [], []>} : vector<16x8xf32>, vector<8x30xf32>, vector<16x30xf32> -> vector<16x30xf32>
    %63 = vector.extract_strided_slice %24 {offsets = [2, 0, 0], sizes = [1, 1, 30], strides = [1, 1, 1]} : vector<4x1x42xf32> to vector<1x1x30xf32>
    %64 = vector.shape_cast %63 : vector<1x1x30xf32> to vector<1x30xf32>
    %65 = vector.broadcast %64 : vector<1x30xf32> to vector<16x30xf32>
    %66 = arith.addf %62, %65 : vector<16x30xf32>
    %cst_26 = arith.constant 0.000000e+00 : f32
    %67 = vector.broadcast %cst_26 : f32 to vector<16x30xf32>
    %68 = arith.maximumf %66, %67 : vector<16x30xf32>
    %69 = vector.extract_strided_slice %23 {offsets = [2, 0, 0], sizes = [1, 30, 12], strides = [1, 1, 1]} : vector<4x30x12xf32> to vector<1x30x12xf32>
    %70 = vector.shape_cast %69 : vector<1x30x12xf32> to vector<30x12xf32>
    %cst_27 = arith.constant dense<0.000000e+00> : vector<16x12xf32>
    %71 = tpu.matmul %68, %70, %cst_27 {dimension_numbers = #tpu.dot_dimension_numbers<[1], [0], [0], [1], [0, 0, 1, 1], [], []>} : vector<16x30xf32>, vector<30x12xf32>, vector<16x12xf32> -> vector<16x12xf32>
    %cst_28 = arith.constant dense<0.000000e+00> : vector<16x12xf32>
    %72 = tpu.matmul %21, %71, %cst_28 {dimension_numbers = #tpu.dot_dimension_numbers<[1], [0], [0], [1], [0, 0, 1, 1], [], []>} : vector<16x16xf32>, vector<16x12xf32>, vector<16x12xf32> -> vector<16x12xf32>
    %cst_29 = arith.constant dense<0.000000e+00> : vector<16x12xf32>
    %73 = tpu.matmul %21, %72, %cst_29 {dimension_numbers = #tpu.dot_dimension_numbers<[1], [0], [0], [1], [0, 0, 1, 1], [], []>} : vector<16x16xf32>, vector<16x12xf32>, vector<16x12xf32> -> vector<16x12xf32>
    %74 = vector.extract_strided_slice %24 {offsets = [2, 0, 30], sizes = [1, 1, 12], strides = [1, 1, 1]} : vector<4x1x42xf32> to vector<1x1x12xf32>
    %75 = vector.shape_cast %74 : vector<1x1x12xf32> to vector<1x12xf32>
    %76 = vector.broadcast %75 : vector<1x12xf32> to vector<16x12xf32>
    %77 = arith.addf %73, %76 : vector<16x12xf32>
    %cst_30 = arith.constant dense<0.000000e+00> : vector<16x8xf32>
    %78 = tpu.matmul %21, %59, %cst_30 {dimension_numbers = #tpu.dot_dimension_numbers<[1], [0], [0], [1], [0, 0, 1, 1], [], []>} : vector<16x16xf32>, vector<16x8xf32>, vector<16x8xf32> -> vector<16x8xf32>
    %79 = vector.extract_strided_slice %22 {offsets = [3, 0, 0], sizes = [1, 8, 30], strides = [1, 1, 1]} : vector<4x8x30xf32> to vector<1x8x30xf32>
    %80 = vector.shape_cast %79 : vector<1x8x30xf32> to vector<8x30xf32>
    %cst_31 = arith.constant dense<0.000000e+00> : vector<16x30xf32>
    %81 = tpu.matmul %78, %80, %cst_31 {dimension_numbers = #tpu.dot_dimension_numbers<[1], [0], [0], [1], [0, 0, 1, 1], [], []>} : vector<16x8xf32>, vector<8x30xf32>, vector<16x30xf32> -> vector<16x30xf32>
    %82 = vector.extract_strided_slice %24 {offsets = [3, 0, 0], sizes = [1, 1, 30], strides = [1, 1, 1]} : vector<4x1x42xf32> to vector<1x1x30xf32>
    %83 = vector.shape_cast %82 : vector<1x1x30xf32> to vector<1x30xf32>
    %84 = vector.broadcast %83 : vector<1x30xf32> to vector<16x30xf32>
    %85 = arith.addf %81, %84 : vector<16x30xf32>
    %cst_32 = arith.constant 0.000000e+00 : f32
    %86 = vector.broadcast %cst_32 : f32 to vector<16x30xf32>
    %87 = arith.maximumf %85, %86 : vector<16x30xf32>
    %88 = vector.extract_strided_slice %23 {offsets = [3, 0, 0], sizes = [1, 30, 12], strides = [1, 1, 1]} : vector<4x30x12xf32> to vector<1x30x12xf32>
    %89 = vector.shape_cast %88 : vector<1x30x12xf32> to vector<30x12xf32>
    %cst_33 = arith.constant dense<0.000000e+00> : vector<16x12xf32>
    %90 = tpu.matmul %87, %89, %cst_33 {dimension_numbers = #tpu.dot_dimension_numbers<[1], [0], [0], [1], [0, 0, 1, 1], [], []>} : vector<16x30xf32>, vector<30x12xf32>, vector<16x12xf32> -> vector<16x12xf32>
    %cst_34 = arith.constant dense<0.000000e+00> : vector<16x12xf32>
    %91 = tpu.matmul %21, %90, %cst_34 {dimension_numbers = #tpu.dot_dimension_numbers<[1], [0], [0], [1], [0, 0, 1, 1], [], []>} : vector<16x16xf32>, vector<16x12xf32>, vector<16x12xf32> -> vector<16x12xf32>
    %cst_35 = arith.constant dense<0.000000e+00> : vector<16x12xf32>
    %92 = tpu.matmul %21, %91, %cst_35 {dimension_numbers = #tpu.dot_dimension_numbers<[1], [0], [0], [1], [0, 0, 1, 1], [], []>} : vector<16x16xf32>, vector<16x12xf32>, vector<16x12xf32> -> vector<16x12xf32>
    %cst_36 = arith.constant dense<0.000000e+00> : vector<16x12xf32>
    %93 = tpu.matmul %21, %92, %cst_36 {dimension_numbers = #tpu.dot_dimension_numbers<[1], [0], [0], [1], [0, 0, 1, 1], [], []>} : vector<16x16xf32>, vector<16x12xf32>, vector<16x12xf32> -> vector<16x12xf32>
    %94 = vector.extract_strided_slice %24 {offsets = [3, 0, 30], sizes = [1, 1, 12], strides = [1, 1, 1]} : vector<4x1x42xf32> to vector<1x1x12xf32>
    %95 = vector.shape_cast %94 : vector<1x1x12xf32> to vector<1x12xf32>
    %96 = vector.broadcast %95 : vector<1x12xf32> to vector<16x12xf32>
    %97 = arith.addf %93, %96 : vector<16x12xf32>
    %98 = tpu.concatenate %40, %58, %77, %97 in 1 : vector<16x12xf32>, vector<16x12xf32>, vector<16x12xf32>, vector<16x12xf32> -> vector<16x48xf32>
    %c0_37 = arith.constant 0 : index
    %c0_38 = arith.constant 0 : index
    %99 = vector.load %arg8[%c0_37, %c0_38] : memref<16x48xf32, #tpu.memory_space<vmem>>, vector<16x48xf32>
    tpu.vector_store %arg8[%c0_37, %c0_38], %98 {strides = array<i32>} : memref<16x48xf32, #tpu.memory_space<vmem>>, vector<16x48xf32>,
    %cst_39 = arith.constant 0.000000e+00 : f32
    %100 = vector.broadcast %cst_39 : f32 to vector<16x48xf32>
    %101 = arith.maximumf %98, %100 : vector<16x48xf32>
    %c0_40 = arith.constant 0 : index
    %c0_41 = arith.constant 0 : index
    %102 = vector.load %arg5[%c0_40, %c0_41] : memref<48x4xf32, #tpu.memory_space<vmem>>, vector<48x4xf32>
    %cst_42 = arith.constant dense<0.000000e+00> : vector<16x4xf32>
    %103 = tpu.matmul %101, %102, %cst_42 {dimension_numbers = #tpu.dot_dimension_numbers<[1], [0], [0], [1], [0, 0, 1, 1], [], []>} : vector<16x48xf32>, vector<48x4xf32>, vector<16x4xf32> -> vector<16x4xf32>
    %c0_43 = arith.constant 0 : index
    %c0_44 = arith.constant 0 : index
    %104 = vector.load %arg6[%c0_43, %c0_44] : memref<1x4xf32, #tpu.memory_space<vmem>>, vector<1x4xf32>
    %105 = vector.broadcast %104 : vector<1x4xf32> to vector<16x4xf32>
    %106 = arith.addf %103, %105 : vector<16x4xf32>
    %c0_45 = arith.constant 0 : index
    %c0_46 = arith.constant 0 : index
    %107 = vector.load %arg7[%c0_45, %c0_46] : memref<16x4xf32, #tpu.memory_space<vmem>>, vector<16x4xf32>
    tpu.vector_store %arg7[%c0_45, %c0_46], %106 {strides = array<i32>} : memref<16x4xf32, #tpu.memory_space<vmem>>, vector<16x4xf32>,
    return
  }
}

</mosaic_0001>

<bundles_post_ra>
// kernel: tpu_custom_call.1
= control target key start
LH: loop header
LB: loop body
LE: loop exit
PB: predicated region body
PF: predicated region fallthrough
CT: control target
= control target key end

     0   :  { %vm35_vm0 = vcmask 64512   ;;  %vm62_vm1 = vcmask 130048   ;;  %s2362_s0 = inlined_call_operand.vmem [shape: f32[16,8], index: 0, kind: input, shape index: {}]   ;;  %s2363_s1 = inlined_call_operand.vmem [shape: f32[16,16], index: 1, kind: input, shape index: {}]   ;;  %s2364_s2 = inlined_call_operand.vmem [shape: f32[4,8,30], index: 2, kind: input, shape index: {}]   ;;  %s2365_s3 = inlined_call_operand.vmem [shape: f32[4,30,12], index: 3, kind: input, shape index: {}]   ;;  %s2366_s4 = inlined_call_operand.vmem [shape: f32[4,1,42], index: 4, kind: input, shape index: {}]   ;;  %s2367_s5 = inlined_call_operand.vmem [shape: f32[48,4], index: 5, kind: input, shape index: {}]   ;;  %s2368_s6 = inlined_call_operand.vmem [shape: f32[1,4], index: 6, kind: input, shape index: {}]   ;;  %s2369_s7 = inlined_call_operand.vmem [shape: f32[16,4], index: 7, kind: output, shape index: {0}]   ;;  %s2370_s8 = inlined_call_operand.hbm [shape: f32[16,48], index: 8, kind: output, shape index: {1}]  }
   0x1   :  { %v2128_v0 = vld [vmem:[%s2362_s0] sm:$0xff]  ;;  %v2138_v2 = vld [vmem:[%s2362_s0 + $0x8] sm:$0xff] }
   0x2   :  { %v2133_v1 = vld [vmem:[%s2363_s1] sm:$0xff]  ;;  %v33_v3 = vmul.f32 %v2128_v0, %v2128_v0  ;;  %v34_v5 = vmul.f32 %v2138_v2, %v2138_v2  ;;  %v2149_v6 = vld [vmem:[%s2363_s1 + $0x8] sm:$0xff] }
   0x3   :  { %v63_v4 = vsel %vm62_vm1, %v2133_v1, 0.0 }
   0x4   :  { %14 = vsyncpa [#allocation3], 0  ;;  %64 = vadd.xlane.f32.xlu1 %v63_v4  ;;  %v36_v7 = vsel %vm35_vm0, %v33_v3, 0.0  ;;  %v66_v8 = vsel %vm62_vm1, %v2149_v6, 0.0  ;;  %v39_v9 = vsel %vm35_vm0, %v34_v5, 0.0  ;;  %v107_v10 = vld [vmem:[%s2364_s2] sm:$0xff]  ;;  %v79_v19 = vlaneseq }
   0x5   :  { %37 = vadd.xlane.f32.xlu0 %v36_v7  ;;  %1798 = vmatprep.subr.mxu0 %v107_v10  ;;  %v111_v11 = vld [vmem:[%s2365_s3] sm:$0xff]  ;;  %v112_v12 = vld [vmem:[%s2365_s3 + $0x8] sm:$0xff]  ;;  %vm90_vm8 = vcmask 130112   ;;  %v113_v52 = vld [vmem:[%s2365_s3 + $0x10] sm:$0xff]  ;;  %vm230_vm9 = vcmask 1045504   ;;  %vm2072_vm10 = vmmov 1  }
   0x6   :  { %1799 = vmatpush3.msra.mxu0 %v107_v10  ;;  %v1940_v13 = vpack.c.bf16 %v112_v12, %v111_v11  ;;  %v80_v24 = vand.u32 127, %v79_v19  ;;  %v82_v30 = vshrl.u32 %v79_v19, 7  ;;  %v114_v53 = vld [vmem:[%s2365_s3 + $0x18] sm:$0x3f]  ;;  %vm2184_vm11 = vmpackc.low %vm230_vm9, %vm2072_vm10  ;;  %v108_v56 = vld [vmem:[%s2364_s2 + $0x8] sm:$0xff]  ;;  %s2073_s25 = smov 98  }
   0x7   :  { %v1944_v54 = vpack.c.bf16 %v114_v53, %v113_v52  ;;  %v2198_v57 = vld [vmem:[%s2366_s4 + $0x2] ss:$0 sm:$0xff]  ;;  %v2204_v58 = vld [vmem:[%s2366_s4 + $0x3] ss:$0 sm:$0xff]  ;;  %v1673_v59 = vld [vmem:[%s2366_s4] ss:$0 sm:$0xff] }
   0x8   :  { %67 = vadd.xlane.f32.xlu1 %v66_v8  ;;  %1941 = vmatprep.subr.bf16.mxu1 %v1940_v13  ;;  %v85_v32 = vadd.s32 4294967288, %v80_v24  ;;  %v83_v36 = vsub.s32 %v80_v24, %v82_v30  ;;  %vm223_vm12 = vcmask 244736   ;;  %v115_v5 = vld [vmem:[%s2365_s3 + $0x20] sm:$0xff]  ;;  %v118_v10 = vld [vmem:[%s2365_s3 + $0x38] sm:$0x3f]  ;;  %s2075_s0 = smov 24  }
   0x9   :  { %40 = vadd.xlane.f32.xlu0 %v39_v9  ;;  %1943 = vmatpush3.bf16.msra.mxu1 %v1940_v13  ;;  %v1681_v8 = vld [vmem:[%s2366_s4 + $0x1] ss:$0 sm:$0xff]  ;;  %v117_v9 = vld [vmem:[%s2365_s3 + $0x30] sm:$0xff]  ;;  %s2076_s22 = smov 36   ;;  %vm1542_vm13 = vcmask 97280   ;;  %vm1545_vm14 = vcmask 195584  }
   0xa   :  { %v88_v37 = vsub.s32 %v85_v32, %v82_v30  ;;  %1946 = vmatprep.subr.msk.bf16.mxu1 %vm2184_vm11, %v1944_v54  ;;  %v1958_v11 = vpack.c.bf16 %v118_v10, %v117_v9  ;;  %v119_v24 = vld [vmem:[%s2365_s3 + $0x40] sm:$0xff]  ;;  %v121_v32 = vld [vmem:[%s2365_s3 + $0x50] sm:$0xff]  ;;  %vm1548_vm15 = vcmask 293888  }
   0xd   :  { %1949 = vmatpush3.bf16.msk.msra.mxu1 %vm2184_vm11, %v1944_v54  ;;  %v110_v54 = vld [vmem:[%s2364_s2 + $0x18] sm:$0xff] }
  0x19   :  { %964 = vrot.lane.b32.xlu1 %v2198_v57, %s2073_s25 }
  0x1d   :  { %1440 = vrot.lane.b32.xlu1 %v2204_v58, %s2073_s25 }
  0x1f   :  { %563 = vrot.lane.b32.xlu0 %v1681_v8, %s2073_s25 }
  0x21   :  { %220 = vrot.lane.b32.xlu1 %v1673_v59, %s2073_s25  ;;  %s2074_s25 = smov 12  }
  0x91   :  { %v65_v15 = vpop.xlane.xlu1 %64 }
  0x92   :  { %v38_v14 = vpop.xlane.xlu0 %37  ;;  %vm69_vm6 = vcmp.gt.f32.partialorder %v65_v15, 0.0 }
  0x93   :  { %2036 = vrsqrt.f32 %v38_v14  ;;  %vm44_vm2 = vcmp.eq.f32.partialorder %v38_v14, inf  ;;  %v47_v21 = vand.u32 2147483648, %v38_v14  ;;  %vm46_vm3 = vcmp.eq.f32.partialorder %v38_v14, 0.0 }
  0x95   :  { %v68_v17 = vpop.xlane.xlu1 %67 }
  0x96   :  { %v41_v16 = vpop.xlane.xlu0 %40  ;;  %vm70_vm7 = vcmp.gt.f32.partialorder %v68_v17, 0.0 }
  0x97   :  { %2038 = vrsqrt.f32 %v41_v16  ;;  %vm51_vm4 = vcmp.eq.f32.partialorder %v41_v16, inf  ;;  %v54_v28 = vand.u32 2147483648, %v41_v16  ;;  %vm53_vm5 = vcmp.eq.f32.partialorder %v41_v16, 0.0 }
  0x98   :  { %2040 = vrsqrt.f32 %v65_v15 }
  0x99   :  { %2042 = vrsqrt.f32 %v68_v17 }
  0x9d   :  { %v2037_v18 = vpop.eup %2036 }
  0x9e   :  { %v43_v20 = vmul.f32 %v2037_v18, %v38_v14 }
  0xa0   :  { %v45_v22 = vsel %vm44_vm2, %v38_v14, %v43_v20 }
  0xa1   :  { %v2039_v23 = vpop.eup %2038  ;;  %v48_v25 = vsel %vm46_vm3, %v47_v21, %v45_v22 }
  0xa2   :  { %v50_v26 = vmul.f32 %v2039_v23, %v41_v16  ;;  %v56_v27 = vmax.f32 %v48_v25, 1e-12  ;;  %v2041_v33 = vpop.eup %2040  ;;  %v109_v23 = vld [vmem:[%s2364_s2 + $0x10] sm:$0xff]  ;;  %v120_v25 = vld [vmem:[%s2365_s3 + $0x48] sm:$0xff] }
  0xa3   :  { %v2043_v35 = vpop.eup %2042  ;;  %v73_v38 = vsel %vm69_vm6, %v2041_v33, 0.0  ;;  %v122_v33 = vld [vmem:[%s2365_s3 + $0x58] sm:$0x3f] }
  0xa4   :  { %v52_v29 = vsel %vm51_vm4, %v41_v16, %v50_v26  ;;  %2044 = vrcp.f32 %v56_v27  ;;  %v74_v39 = vsel %vm70_vm7, %v2043_v35, 0.0  ;;  %v84_v40 = vrot.slane %v73_v38, %v83_v36  ;;  %v564_v27 = vpop.permute.xlu0 %563 }
  0xa5   :  { %v55_v31 = vsel %vm53_vm5, %v54_v28, %v52_v29  ;;  %v89_v41 = vrot.slane %v74_v39, %v88_v37  ;;  %v75_v44 = vmul.f32 %v73_v38, %v2133_v1  ;;  %v76_v49 = vmul.f32 %v74_v39, %v2149_v6  ;;  %v116_v6 = vld [vmem:[%s2365_s3 + $0x28] sm:$0xff] }
  0xa6   :  { %v57_v34 = vmax.f32 %v55_v31, 1e-12  ;;  %v1954_v7 = vpack.c.bf16 %v116_v6, %v115_v5  ;;  %v1972_v26 = vpack.c.bf16 %v120_v25, %v119_v24  ;;  %v1976_v36 = vpack.c.bf16 %v122_v33, %v121_v32  ;;  %v1561_v24 = vld [vmem:[%s2367_s5 + $0x28] sm:$0xff] }
  0xa7   :  { %v91_v45 = vsel %vm90_vm8, %v89_v41, %v84_v40 }
  0xa8   :  { %2046 = vrcp.f32 %v57_v34  ;;  %v2168_v48 = vmul.f32 %v91_v45, %v75_v44  ;;  %v2174_v51 = vmul.f32 %v91_v45, %v76_v49  ;;  %1955 = vmatprep.subr.bf16.mxu1 %v1954_v7 }
  0xae   :  { %v2045_v42 = vpop.eup %2044 }
  0xaf   :  { %v59_v43 = vmul.f32 %v2045_v42, %v2128_v0 }
  0xb1   :  { %1800 = vmatprep.mubr.msk.f32.mxu0 %vm35_vm0, %v59_v43 }
  0xb2   :  { %v2047_v46 = vpop.eup %2046 }
  0xb3   :  { %v61_v47 = vmul.f32 %v2047_v46, %v2138_v2 }
  0xb5   :  { %v1950_v50 = vpack.c.bf16 %v61_v47, %v59_v43  ;;  %1801 = vmatmul.mubr.msk.f32.vlgmr.msra.gmra.mrb[0].mxu0 %vm35_vm0, %v61_v47 }
  0xb6   :  { %1818 = vmatprep.mubr.msk.f32.mxu0 %vm62_vm1, %v2168_v48 }
  0xb7   :  { %1951 = vmatprep.subr.bf16.mxu0 %v1950_v50 }
  0xb8   :  { %1953 = vmatpush3.bf16.msra.mxu0 %v1950_v50 }
  0xb9   :  { %1821 = vmatprep.subr.mxu0 %v108_v56 }
  0xbb   :  { %1819 = vmatmul.mubr.msk.f32.vlgmr.msra.gmra.mrb[2].mxu0 %vm62_vm1, %v2174_v51 }
  0xbc   :  { %1822 = vmatpush3.msra.mxu0 %v108_v56  ;;  %v123_v56 = vld [vmem:[%s2365_s3 + $0x60] sm:$0xff] }
 0x188   :  { %v1802_v60 = vpop.f32.mrb[0].mxu0 }
 0x189   :  { %v215_v61 = vadd.f32 %v1802_v60, %v1673_v59  ;;  %v209_v62 = vpop.f32.mrb[1].mxu0  ;;  %v125_v60 = vld [vmem:[%s2365_s3 + $0x70] sm:$0xff] }
 0x18a   :  { %v210_v63 = vadd.f32 %v1673_v59, %v209_v62 }
 0x18b   :  { %v219_v1 = vmax.f32 %v215_v61, 0.0  ;;  %v126_v61 = vld [vmem:[%s2365_s3 + $0x78] sm:$0x3f] }
 0x18c   :  { %v218_v0 = vmax.f32 %v210_v63, 0.0  ;;  %v1998_v62 = vpack.c.bf16 %v126_v61, %v125_v60  ;;  %v965_v63 = vpop.permute.xlu1 %964 }
 0x18e   :  { %1811 = vmatprep.mubr.msk.f32.mxu1 %vm223_vm12, %v218_v0  ;;  %v1820_v2 = vpop.f32.mrb[2].mxu0 }
 0x18f   :  { %1812 = vmatmul.mubr.msk.f32.vlgmr.msra.gmra.mrb[0].mxu1 %vm223_vm12, %v219_v1  ;;  %v381_v3 = vpop.f32.mrb[3].mxu0 }
 0x190   :  { %v1968_v4 = vpack.c.bf16 %v1820_v2, %v381_v3  ;;  %1823 = vmatprep.mubr.msk.f32.mxu0 %vm35_vm0, %v381_v3  ;;  %1957 = vmatpush3.bf16.msra.mxu1 %v1954_v7 }
 0x191   :  { %1824 = vmatmul.mubr.msk.f32.vlgmr.msra.gmra.mrb[4].mxu0 %vm35_vm0, %v1820_v2  ;;  %1960 = vmatprep.subr.msk.bf16.mxu1 %vm2184_vm11, %v1958_v11 }
 0x192   :  { %1841 = vmatprep.mubr.msk.f32.mxu0 %vm62_vm1, %v2168_v48 }
 0x194   :  { %1963 = vmatpush3.bf16.msk.msra.mxu1 %vm2184_vm11, %v1958_v11 }
 0x262   :  { %v2235_v12 = vpop.f32.mrb[0].mxu1 }
 0x263   :  { %v2237_v13 = vpop.f32.mrb[1].mxu1 }
 0x264   :  { %v1825_v14 = vpop.f32.mrb[4].mxu0 }
 0x265   :  { %v474_v15 = vadd.f32 %v1825_v14, %v1681_v8  ;;  %v468_v16 = vpop.f32.mrb[5].mxu0 }
 0x266   :  { %v469_v17 = vadd.f32 %v1681_v8, %v468_v16 }
 0x267   :  { %v478_v19 = vmax.f32 %v474_v15, 0.0 }
 0x268   :  { %v477_v18 = vmax.f32 %v469_v17, 0.0 }
 0x26a   :  { %1834 = vmatprep.mubr.msk.f32.mxu1 %vm223_vm12, %v477_v18 }
 0x26b   :  { %1835 = vmatmul.mubr.msk.f32.vlgmr.msra.gmra.mrb[2].mxu1 %vm223_vm12, %v478_v19  ;;  %v1557_v19 = vld [vmem:[%s2367_s5 + $0x8] sm:$0xff] }
 0x26c   :  { %1871 = vmatprep.mubr.msk.f32.mxu1 %vm62_vm1, %v2168_v48 }
 0x33e   :  { %v1836_v20 = vpop.f32.mrb[2].mxu1 }
 0x33f   :  { %v554_v21 = vpop.f32.mrb[3].mxu1 }
 0x340   :  { %v1964_v22 = vpack.c.bf16 %v1836_v20, %v554_v21  ;;  %v1558_v20 = vld [vmem:[%s2367_s5 + $0x10] sm:$0xff] }
 0x342   :  { %1965 = vmatprep.subr.bf16.mxu0 %v1964_v22 }
 0x343   :  { %1967 = vmatpush3.bf16.msra.mxu0 %v1964_v22  ;;  %v1559_v22 = vld [vmem:[%s2367_s5 + $0x18] sm:$0xff] }
 0x344   :  { %1969 = vmatprep.subr.bf16.mxu0 %v1968_v4 }
 0x346   :  { %1842 = vmatmul.mubr.msk.f32.vlgmr.msra.gmra.mrb[6].mxu0 %vm62_vm1, %v2174_v51 }
 0x347   :  { %1971 = vmatpush3.bf16.msra.mxu0 %v1968_v4  ;;  %1848 = vmatprep.mubr.msk.f32.mxu0 %vm62_vm1, %v2168_v48 }
 0x348   :  { %1851 = vmatprep.subr.mxu0 %v109_v23 }
 0x34a   :  { %1849 = vmatmul.mubr.msk.f32.vlgmr.msra.gmra.mrb[8].mxu0 %vm62_vm1, %v2174_v51 }
 0x34b   :  { %1852 = vmatpush3.msra.mxu0 %v109_v23  ;;  %v2020_v23 = vpack.c.bf16 %v1559_v22, %v1558_v20 }
 0x34c   :  { %1973 = vmatprep.subr.bf16.mxu0 %v1972_v26 }
 0x419   :  { %v1843_v28 = vpop.f32.mrb[6].mxu0 }
 0x41a   :  { %v638_v29 = vadd.f32 %v1843_v28, %v564_v27  ;;  %v632_v30 = vpop.f32.mrb[7].mxu0 }
 0x41b   :  { %v633_v31 = vadd.f32 %v632_v30, %v564_v27 }
 0x41c   :  { %1522 = vrot.lane.b32.xlu1 %v638_v29, %s2074_s25 }
 0x41d   :  { %v1850_v34 = vpop.f32.mrb[8].mxu0  ;;  %1520 = vrot.lane.b32.xlu0 %v633_v31, %s2074_s25 }
 0x41e   :  { %v707_v35 = vpop.f32.mrb[9].mxu0 }
 0x41f   :  { %v1990_v37 = vpack.c.bf16 %v1850_v34, %v707_v35  ;;  %1853 = vmatprep.mubr.msk.f32.mxu0 %vm35_vm0, %v707_v35 }
 0x420   :  { %1854 = vmatmul.mubr.msk.f32.vlgmr.msra.gmra.mrb[10].mxu0 %vm35_vm0, %v1850_v34 }
 0x421   :  { %1975 = vmatpush3.bf16.msra.mxu0 %v1972_v26  ;;  %v1441_v26 = vpop.permute.xlu1 %1440 }
 0x422   :  { %1978 = vmatprep.subr.msk.bf16.mxu0 %vm2184_vm11, %v1976_v36 }
 0x425   :  { %1981 = vmatpush3.bf16.msk.msra.mxu0 %vm2184_vm11, %v1976_v36  ;;  %v221_v31 = vpop.permute.xlu1 %220 }
 0x426   :  { %1991 = vmatprep.subr.bf16.mxu0 %v1990_v37  ;;  %v306_v35 = vadd.f32 %v2235_v12, %v221_v31 }
 0x48e   :  { %v1523_v32 = vpop.permute.xlu1 %1522 }
 0x48f   :  { %v1521_v33 = vpop.permute.xlu0 %1520 }
 0x4f3   :  { %v1855_v38 = vpop.f32.mrb[10].mxu0 }
 0x4f4   :  { %v800_v39 = vadd.f32 %v1855_v38, %v2198_v57  ;;  %v794_v40 = vpop.f32.mrb[11].mxu0  ;;  %v1544_v38 = vsel %vm1542_vm13, %v306_v35, %v1523_v32 }
 0x4f5   :  { %v795_v41 = vadd.f32 %v2198_v57, %v794_v40  ;;  %v124_v57 = vld [vmem:[%s2365_s3 + $0x68] sm:$0xff] }
 0x4f6   :  { %v804_v43 = vmax.f32 %v800_v39, 0.0  ;;  %v1994_v59 = vpack.c.bf16 %v124_v57, %v123_v56 }
 0x4f7   :  { %v803_v42 = vmax.f32 %v795_v41, 0.0 }
 0x4f9   :  { %1864 = vmatprep.mubr.msk.f32.mxu0 %vm223_vm12, %v803_v42 }
 0x4fa   :  { %1865 = vmatmul.mubr.msk.f32.vlgmr.msra.gmra.mrb[12].mxu0 %vm223_vm12, %v804_v43 }
 0x4fb   :  { %1993 = vmatpush3.bf16.msra.mxu0 %v1990_v37  ;;  %1885 = vmatprep.mubr.msk.f32.mxu0 %vm62_vm1, %v2168_v48  ;;  %v301_v37 = vadd.f32 %v2237_v13, %v221_v31 }
 0x4fc   :  { %1995 = vmatprep.subr.bf16.mxu0 %v1994_v59 }
 0x4fd   :  { %v1543_v39 = vsel %vm1542_vm13, %v301_v37, %v1521_v33 }
 0x4fe   :  { %1886 = vmatmul.mubr.msk.f32.vlgmr.msra.gmra.mrb[14].mxu0 %vm62_vm1, %v2174_v51 }
 0x4ff   :  { %1997 = vmatpush3.bf16.msra.mxu0 %v1994_v59 }
 0x500   :  { %2000 = vmatprep.subr.msk.bf16.mxu0 %vm2184_vm11, %v1998_v62 }
 0x503   :  { %2003 = vmatpush3.bf16.msk.msra.mxu0 %vm2184_vm11, %v1998_v62 }
 0x5cd   :  { %v1866_v44 = vpop.f32.mrb[12].mxu0 }
 0x5ce   :  { %v880_v45 = vpop.f32.mrb[13].mxu0 }
 0x5cf   :  { %v1982_v46 = vpack.c.bf16 %v1866_v44, %v880_v45 }
 0x5d1   :  { %1983 = vmatprep.subr.bf16.mxu1 %v1982_v46  ;;  %v1887_v47 = vpop.f32.mrb[14].mxu0 }
 0x5d2   :  { %1985 = vmatpush3.bf16.msra.mxu1 %v1982_v46  ;;  %v1108_v49 = vpop.f32.mrb[15].mxu0 }
 0x5d5   :  { %1872 = vmatmul.mubr.msk.f32.vlgmr.msra.gmra.mrb[4].mxu1 %vm62_vm1, %v2174_v51 }
 0x5d6   :  { %1878 = vmatprep.mubr.msk.f32.mxu1 %vm62_vm1, %v2168_v48 }
 0x6a8   :  { %v1873_v50 = vpop.f32.mrb[4].mxu1 }
 0x6a9   :  { %v955_v52 = vpop.f32.mrb[5].mxu1 }
 0x6aa   :  { %v1986_v53 = vpack.c.bf16 %v1873_v50, %v955_v52 }
 0x6ac   :  { %1987 = vmatprep.subr.bf16.mxu1 %v1986_v53 }
 0x6ad   :  { %1989 = vmatpush3.bf16.msra.mxu1 %v1986_v53 }
 0x6ae   :  { %1888 = vmatprep.subr.mxu1 %v110_v54 }
 0x6b0   :  { %1879 = vmatmul.mubr.msk.f32.vlgmr.msra.gmra.mrb[6].mxu1 %vm62_vm1, %v2174_v51 }
 0x6b1   :  { %1889 = vmatpush3.msra.mxu1 %v110_v54  ;;  %1890 = vmatprep.mubr.msk.f32.mxu1 %vm35_vm0, %v1108_v49 }
 0x6b4   :  { %1891 = vmatmul.mubr.msk.f32.vlgmr.msra.gmra.mrb[8].mxu1 %vm35_vm0, %v1887_v47  ;;  %vm1551_vm0 = vcmask 392192  }
 0x6b5   :  { %1908 = vmatprep.mubr.msk.f32.mxu1 %vm62_vm1, %v2168_v48 }
 0x783   :  { %v1880_v0 = vpop.f32.mrb[6].mxu1 }
 0x784   :  { %v1039_v1 = vadd.f32 %v1880_v0, %v965_v63  ;;  %v1033_v2 = vpop.f32.mrb[7].mxu1 }
 0x785   :  { %v1034_v3 = vadd.f32 %v1033_v2, %v965_v63 }
 0x786   :  { %1530 = vrot.lane.b32.xlu1 %v1039_v1, %s2075_s0 }
 0x787   :  { %v1892_v4 = vpop.f32.mrb[8].mxu1  ;;  %1528 = vrot.lane.b32.xlu0 %v1034_v3, %s2075_s0 }
 0x788   :  { %v1201_v5 = vadd.f32 %v1892_v4, %v2204_v58  ;;  %v1195_v6 = vpop.f32.mrb[9].mxu1 }
 0x789   :  { %v1196_v7 = vadd.f32 %v2204_v58, %v1195_v6 }
 0x78a   :  { %v1205_v9 = vmax.f32 %v1201_v5, 0.0 }
 0x78b   :  { %v1204_v8 = vmax.f32 %v1196_v7, 0.0 }
 0x78d   :  { %1901 = vmatprep.mubr.msk.f32.mxu0 %vm223_vm12, %v1204_v8 }
 0x78e   :  { %1902 = vmatmul.mubr.msk.f32.vlgmr.msra.gmra.mrb[16].mxu0 %vm223_vm12, %v1205_v9 }
 0x78f   :  { %1922 = vmatprep.mubr.msk.f32.mxu0 %vm62_vm1, %v2168_v48 }
 0x7f8   :  { %v1531_v34 = vpop.permute.xlu1 %1530 }
 0x7f9   :  { %v1529_v36 = vpop.permute.xlu0 %1528  ;;  %v1547_v40 = vsel %vm1545_vm14, %v1544_v38, %v1531_v34 }
 0x7fa   :  { %v1546_v42 = vsel %vm1545_vm14, %v1543_v39, %v1529_v36 }
 0x861   :  { %v1903_v55 = vpop.f32.mrb[16].mxu0 }
 0x862   :  { %v1281_v10 = vpop.f32.mrb[17].mxu0 }
 0x863   :  { %v2004_v11 = vpack.c.bf16 %v1903_v55, %v1281_v10 }
 0x865   :  { %2005 = vmatprep.subr.bf16.mxu1 %v2004_v11 }
 0x866   :  { %2007 = vmatpush3.bf16.msra.mxu1 %v2004_v11 }
 0x869   :  { %1909 = vmatmul.mubr.msk.f32.vlgmr.msra.gmra.mrb[10].mxu1 %vm62_vm1, %v2174_v51 }
 0x86a   :  { %1915 = vmatprep.mubr.msk.f32.mxu1 %vm62_vm1, %v2168_v48  ;;  %v1556_v48 = vld [vmem:[%s2367_s5] sm:$0xff] }
 0x86b   :  { %v2016_v21 = vpack.c.bf16 %v1557_v19, %v1556_v48 }
 0x93c   :  { %v1910_v58 = vpop.f32.mrb[10].mxu1 }
 0x93d   :  { %v1356_v14 = vpop.f32.mrb[11].mxu1 }
 0x93e   :  { %v2008_v15 = vpack.c.bf16 %v1910_v58, %v1356_v14 }
 0x940   :  { %2009 = vmatprep.subr.bf16.mxu1 %v2008_v15 }
 0x941   :  { %2011 = vmatpush3.bf16.msra.mxu1 %v2008_v15 }
 0x942   :  { %2017 = vmatprep.subr.bf16.mxu1 %v2016_v21 }
 0x944   :  { %1916 = vmatmul.mubr.msk.f32.vlgmr.msra.gmra.mrb[12].mxu1 %vm62_vm1, %v2174_v51 }
 0x945   :  { %2019 = vmatpush3.bf16.msra.mxu1 %v2016_v21 }
 0x946   :  { %2021 = vmatprep.subr.bf16.mxu1 %v2020_v23 }
 0x949   :  { %2023 = vmatpush3.bf16.msra.mxu1 %v2020_v23 }
 0xa17   :  { %v1917_v16 = vpop.f32.mrb[12].mxu1 }
 0xa18   :  { %v1431_v17 = vpop.f32.mrb[13].mxu1 }
 0xa19   :  { %v2012_v18 = vpack.c.bf16 %v1917_v16, %v1431_v17 }
 0xa1b   :  { %2013 = vmatprep.subr.bf16.mxu0 %v2012_v18 }
 0xa1c   :  { %2015 = vmatpush3.bf16.msra.mxu0 %v2012_v18 }
 0xa1f   :  { %1923 = vmatmul.mubr.msk.f32.vlgmr.msra.gmra.mrb[18].mxu0 %vm62_vm1, %v2174_v51  ;;  %v1560_v51 = vld [vmem:[%s2367_s5 + $0x20] sm:$0xff]  ;;  %s2077_s5 = smov [#allocation2]  }
 0xa20   :  { %v2024_v25 = vpack.c.bf16 %v1561_v24, %v1560_v51  ;;  %s1660_s23 = sshll.u32 %s2077_s5, 4  ;;  %s1661_s23 = int_to_ptr.vmem [resolvable:$true] %s1660_s23 }
 0xa21   :  { %s2048_s24 = scalar_lea.vmem %s1661_s23, 256  ;;  %p2053_p1 = scmp.lt.s32.totalorder %s1661_s23, %s1661_s23 }
 0xa22   :  { %2025 = vmatprep.subr.bf16.mxu1 %v2024_v25  ;;  %p2049_p0 = scmp.ne.s32.totalorder %s1661_s23, %s2048_s24  ;;  %p2054_p2 = scmp.lt.s32.totalorder %s2048_s24, %s2048_s24 }
 0xa23   :  { %2027 = vmatpush3.bf16.msra.mxu1 %v2024_v25 }
 0xa24   :  { %p2055_p3 = por %p2054_p2, %p2053_p1 }
 0xa26   :  { %p2056_p4 = pnand %p2055_p3, %p2049_p0 }
 0xaf2   :  { %v1924_v27 = vpop.f32.mrb[18].mxu0 }
 0xaf3   :  { %v1515_v28 = vadd.f32 %v1924_v27, %v1441_v26  ;;  %v1509_v29 = vpop.f32.mrb[19].mxu0 }
 0xaf4   :  { %v1510_v30 = vadd.f32 %v1509_v29, %v1441_v26 }
 0xaf5   :  { %1538 = vrot.lane.b32.xlu1 %v1515_v28, %s2076_s22 }
 0xaf6   :  { %1536 = vrot.lane.b32.xlu0 %v1510_v30, %s2076_s22 }
 0xb67   :  { %v1539_v41 = vpop.permute.xlu1 %1538 }
 0xb68   :  { %v1550_v43 = vsel %vm1548_vm15, %v1547_v40, %v1539_v41  ;;  %v1537_v44 = vpop.permute.xlu0 %1536 }
 0xb69   :  { %1553 = vst.msk [vmem:[#allocation2 + $0x8] sm:$0xff] %vm1551_vm0, %v1550_v43  ;;  %v1549_v45 = vsel %vm1548_vm15, %v1546_v42, %v1537_v44  ;;  %v1555_v47 = vmax.f32 %v1550_v43, 0.0 }
 0xb6a   :  { %1552 = vst.msk [vmem:[#allocation2] sm:$0xff] %vm1551_vm0, %v1549_v45  ;;  %v1554_v46 = vmax.f32 %v1549_v45, 0.0 }
 0xb6c   :  { %1937 = vmatprep.mubr.msk.f32.mxu1 %vm1551_vm0, %v1554_v46 }
 0xb6d   :  { %1938 = vmatmul.mubr.msk.f32.vlgmr.msra.gmra.mrb[14].mxu1 %vm1551_vm0, %v1555_v47 }
 0xb6e   :  { %2059 = shalt.err (!%p2056_p4)
}
 0xb6f   :  { %s2060_s27 = scalar_lea.hbm %s2370_s8, 256 }
 0xb70   :  { %p2061_p5 = scmp.ne.s32.totalorder %s2370_s8, %s2060_s27  ;;  %p2064_p6 = scmp.lt.u32.totalorder %s2060_s27, %s2370_s8 }
 0xb72   :  { %p2066_p7 = pnand %p2064_p6, %p2061_p5 }
 0xb74   :  { %2069 = shalt.err (!%p2066_p7)
}
 0xb75   :  { %s2078_s9 = smov 128   ;;  %s2079_s10 = smov 8   ;;  %v1715_v12 = vld [vmem:[%s2368_s6] ss:$0 sm:$0xff]  ;;  %vm1650_vm1 = vcmask 31744  }
 0xb76   :  { %1666 = dma.vmem_to_hbm [thread:$0]  %s1661_s23, 256, %s2370_s8, [#allocation3], %s2078_s9, %s2078_s9, %s2079_s10  }
 0xc40   :  { %v1939_v13 = vpop.f32.mrb[14].mxu1 }
 0xc41   :  { %v1647_v49 = vadd.f32 %v1939_v13, %v1715_v12  ;;  %v1641_v50 = vpop.f32.mrb[15].mxu1 }
 0xc42   :  { %v1642_v52 = vadd.f32 %v1715_v12, %v1641_v50 }
 0xc43   :  { %1652 = vst.msk [vmem:[%s2369_s7 + $0x8] sm:$0xff] %vm1650_vm1, %v1647_v49 }
 0xc44   :  { %1651 = vst.msk [vmem:[%s2369_s7] sm:$0xff] %vm1650_vm1, %v1642_v52 }
 0xc45   :  { %2070 = dma.done.wait [#allocation3], 256  }
 0xc46   :  { %2071 = vsyncadd [#allocation3], 4294967040 }
 0xc47   :  { %1672 = vsyncpa [#allocation3], 1 }

</bundles_post_ra>
